<compile_context>
chip_gen: v5e
topology: v5e:2x2
jax: 0.10.0
libtpu: 0.0.40
codegen_flags: <defaults>
</compile_context>

<pallas_src>
import jax
import jax.numpy as jnp
from jax import lax
from jax.experimental import pallas as pl
from jax.experimental.pallas import tpu as pltpu

KH, KW = 3, 3
LOGSCALE_FACTOR = 3.0


def _round_up(x, m):
    return (x + m - 1) // m * m


def _conv2dzeros_kernel(x_ref, w_ref, b_ref, o_ref):
    # x_ref : (bb, H+2, Kpad)   lane-dense, lane-padded padded-input rows
    # w_ref : (KH, Kpad, Lpad)  banded conv weights with exp(logs*3) folded in
    # b_ref : (1, Lpad)         bias * exp(logs*3), tiled over w (f32)
    # o_ref : (bb*H, Lpad)      lane-dense output rows
    bb, Hp, _ = x_ref.shape
    H = Hp - (KH - 1)
    Lp = o_ref.shape[-1]

    bias = b_ref[...]                                     # (1, Lpad) f32, loaded once

    # Per-batch shifted-window dots: the kw taps + channel mixing are folded
    # into the banded weights, so each vertical tap is one MXU matmul whose LHS
    # is a contiguous sublane window of the padded rows.  No axis-merging
    # reshape -> no materialized VMEM relayout copy.  The (H, Lpad) f32
    # accumulator is a handful of vregs, so no spill risk at any batch_block.
    for b in range(bb):
        acc = jnp.zeros((H, Lp), jnp.float32)
        for kh in range(KH):
            acc = acc + jnp.dot(x_ref[b, kh:kh + H, :], w_ref[kh],
                                preferred_element_type=jnp.float32)
        # Epilogue: scale already folded into w_ref, bias*scale into b_ref.
        o_ref[b * H:(b + 1) * H, :] = (acc + bias).astype(o_ref.dtype)


def _banded_weights(weight_oihw, W, Kpad, Lpad, scale, compute_dtype):
    """(Cout,Cin,3,3) -> (KH, Kpad, Lpad) banded (Toeplitz) matrices, scale folded.

    band[kh][w_in*Cin + c, w_out*Cout + o] = weight[o, c, kh, w_in - w_out] * scale[o]
    for w_in - w_out in {0, 1, 2}, else 0; zero-padded to (Kpad, Lpad).
    Built once in the wrapper so the kernel's LHS/RHS/output are all lane-dense.
    """
    Cout, Cin = weight_oihw.shape[0], weight_oihw.shape[1]
    wt = jnp.transpose(weight_oihw, (2, 3, 1, 0)).astype(jnp.float32)  # (KH,KW,Cin,Cout)
    wt = wt * scale[None, None, None, :]            # fold exp(logs*3) per out channel
    Wp = W + 2
    mats = []
    for kh in range(KH):
        band = jnp.zeros((Wp, Cin, W, Cout), jnp.float32)
        for kw in range(KW):
            sel = jnp.eye(Wp, W, k=-kw, dtype=jnp.float32)             # sel[i,w]=1 iff i==w+kw
            band = band + jnp.einsum('iw,co->icwo', sel, wt[kh, kw])
        band = band.reshape(Wp * Cin, W * Cout)
        band = jnp.pad(band, ((0, Kpad - Wp * Cin), (0, Lpad - W * Cout)))
        mats.append(band)
    return jnp.stack(mats, axis=0).astype(compute_dtype)               # (KH, Kpad, Lpad)


def _tpu_generation_info():
    """Returns (tensorcores_per_chip, vmem_limit_cap_bytes), conservatively."""
    try:
        kind = jax.devices()[0].device_kind.lower()
    except Exception:
        kind = ""
    if "v7" in kind:
        return 2, 44 * 1024 * 1024      # 64 MiB physical VMEM: leave scratch headroom
    if "v5" in kind or "v6" in kind:
        return 1, 96 * 1024 * 1024      # 128 MiB physical, 1 TensorCore per chip
    if "v4" in kind:
        return 2, 64 * 1024 * 1024
    return 1, 48 * 1024 * 1024          # unknown: be conservative


def _pick_batch_block(N, H, Hp, Kpad, Lpad, in_bytes, out_bytes, num_tc, vmem_budget):
    """Batch elements per grid step.

    1-TC chips (v5e/v6e): maximize the block under the VMEM budget — the kernel
    is memory/overhead bound and each grid step costs ~0.35us.  2-TC chips
    (v7x): keep >=2 (ideally an even number of) 'parallel' steps so both
    TensorCores get balanced work and the pipeline has steps to overlap.
    """
    sub = 16 if out_bytes == 2 else 8                       # bf16 packs 2 rows/sublane
    per_b = Hp * Kpad * in_bytes * 2 + H * Lpad * out_bytes * 2   # double-buffered x/out
    fixed = KH * Kpad * Lpad * in_bytes * 2 + Lpad * 4 * 2        # weights + bias (worst case)
    max_bb = max(1, (vmem_budget - fixed) // per_b) if vmem_budget > fixed else 1
    max_bb = int(min(max_bb, 32, N))                        # 32 caps the unrolled batch loop

    divisors = [d for d in range(1, N + 1) if N % d == 0]

    def ok(d):  # output block (d*H, Lpad) must satisfy the sublane tiling rule
        return d == N or (d * H) % sub == 0

    cands = [d for d in divisors if d <= max_bb and ok(d)]
    if not cands:
        return min(d for d in divisors if ok(d))            # d == N always qualifies

    if num_tc >= 2 and N >= 2:
        multi = [d for d in cands if N // d >= 2]
        if multi:
            even = [d for d in multi if (N // d) % 2 == 0]
            return max(even) if even else max(multi)
    return max(cands)


def conv2d_zeros_forward(x_nchw, weight_oihw, bias, logs, *,
                         compute_dtype=jnp.bfloat16, batch_block=None):
    """Forward of Conv2dZeros (3x3, stride 1, 'same', out * exp(logs*3)).

    x_nchw      : (N, Cin, H, W)
    weight_oihw : (Cout, Cin, 3, 3)   (PyTorch layout)
    bias        : (Cout,)
    logs        : (Cout,) or (Cout, 1, 1)
    returns     : (N, Cout, H, W) in x's dtype
    """
    N, Cin, H, W = x_nchw.shape
    Cout = weight_oihw.shape[0]
    out_dtype = x_nchw.dtype
    Hp = H + 2

    K_real = (W + 2) * Cin
    L_real = W * Cout
    Kpad = _round_up(K_real, 128)       # lane-pad input packing
    Lpad = _round_up(L_real, 128)       # lane-pad output -> unmasked stores

    in_bytes = jnp.dtype(compute_dtype).itemsize
    out_bytes = jnp.dtype(out_dtype).itemsize
    num_tc, vmem_cap = _tpu_generation_info()

    if batch_block is None:
        batch_block = _pick_batch_block(N, H, Hp, Kpad, Lpad, in_bytes, out_bytes,
                                        num_tc, vmem_budget=vmem_cap // 2)
    assert N % batch_block == 0, "batch_block must divide N"
    bb = batch_block

    # ---- parameter plumbing (wrapper-side, once) ----------------------------
    logs_f = logs.reshape(-1).astype(jnp.float32)
    scale = jnp.exp(logs_f * LOGSCALE_FACTOR)                          # (Cout,)
    w_band = _banded_weights(weight_oihw, W, Kpad, Lpad, scale, compute_dtype)
    bias_row = jnp.pad(
        jnp.tile(bias.reshape(-1).astype(jnp.float32) * scale, W),
        (0, Lpad - L_real)).reshape(1, Lpad)

    # ---- input relayout: NCHW -> lane-dense padded rows ----------------------
    # transpose + pad + reshape + lane-pad + cast are adjacent so XLA fuses them
    # into a single relayout copy.
    # TODO(synk): the NCHW interface of the PyTorch module forces one wrapper
    # relayout pass on each side; accepting/emitting channels-last layouts
    # would make the kernel's own DMA the only HBM traffic.
    x_nhwc = jnp.transpose(x_nchw, (0, 2, 3, 1))
    x_pad = jnp.pad(x_nhwc, ((0, 0), (1, 1), (1, 1), (0, 0)))
    x_rows = x_pad.reshape(N, Hp, K_real)
    if Kpad != K_real:
        x_rows = jnp.pad(x_rows, ((0, 0), (0, 0), (0, Kpad - K_real)))
    x_rows = x_rows.astype(compute_dtype)

    # ---- VMEM limit from actual block sizes (generation-aware cap) ----------
    block_bytes = (bb * Hp * Kpad * in_bytes * 2            # x block, double-buffered
                   + KH * Kpad * Lpad * in_bytes * 2        # weights (<=2 buffers)
                   + Lpad * 4 * 2                           # bias row
                   + bb * H * Lpad * out_bytes * 2)         # out block, double-buffered
    vmem_limit = int(min(vmem_cap,
                         max(32 * 1024 * 1024,
                             block_bytes * 3 // 2 + 8 * 1024 * 1024)))

    grid = (N // bb,)

    def _run(single_buffer_weights):
        w_kwargs = {}
        if single_buffer_weights:
            # Constant index_map -> one resident copy suffices; halves the
            # weight VMEM footprint (main v7x concern for larger W/Cin/Cout).
            w_kwargs["pipeline_mode"] = pl.Buffered(1)
        return pl.pallas_call(
            _conv2dzeros_kernel,
            out_shape=jax.ShapeDtypeStruct((N * H, Lpad), out_dtype),
            grid_spec=pltpu.PrefetchScalarGridSpec(
                num_scalar_prefetch=0,
                grid=grid,
                in_specs=[
                    pl.BlockSpec((bb, Hp, Kpad), lambda n: (n, 0, 0)),
                    pl.BlockSpec((KH, Kpad, Lpad), lambda n: (0, 0, 0), **w_kwargs),
                    pl.BlockSpec((1, Lpad), lambda n: (0, 0)),
                ],
                out_specs=pl.BlockSpec((bb * H, Lpad), lambda n: (n, 0)),
            ),
            compiler_params=pltpu.CompilerParams(
                dimension_semantics=("parallel",),
                vmem_limit_bytes=vmem_limit,
            ),
        )(x_rows, w_band, bias_row)

    try:
        out2d = _run(single_buffer_weights=True)
    except Exception:
        # pipeline_mode / Buffered(1) not supported by this JAX build: fall
        # back to default double-buffering (correctness identical).
        out2d = _run(single_buffer_weights=False)

    # ---- output: drop lane padding, back to NCHW -----------------------------
    out = out2d.reshape(N, H, Lpad)[:, :, :L_real].reshape(N, H, W, Cout)
    return jnp.transpose(out, (0, 3, 1, 2))


def _reference_forward(x_nchw, weight_oihw, bias, logs, compute_dtype=jnp.float32):
    """Pure-JAX reference.

    f32 path: exact PyTorch Conv2dZeros semantics.
    bf16 path: mirrors the kernel's numerics (scale folded into bf16 weights,
    f32 accumulation) so the comparison isolates kernel plumbing errors.
    """
    logs_f = logs.reshape(-1).astype(jnp.float32)
    scale = jnp.exp(logs_f * LOGSCALE_FACTOR)
    if jnp.dtype(compute_dtype) == jnp.dtype(jnp.float32):
        out = lax.conv_general_dilated(
            x_nchw.astype(jnp.float32), weight_oihw.astype(jnp.float32),
            window_strides=(1, 1), padding=((1, 1), (1, 1)),
            dimension_numbers=("NCHW", "OIHW", "NCHW"),
            preferred_element_type=jnp.float32)
        out = out + bias.reshape(1, -1, 1, 1).astype(jnp.float32)
        out = out * scale.reshape(1, -1, 1, 1)
    else:
        w_eff = (weight_oihw.astype(jnp.float32)
                 * scale[:, None, None, None]).astype(compute_dtype)
        out = lax.conv_general_dilated(
            x_nchw.astype(compute_dtype), w_eff,
            window_strides=(1, 1), padding=((1, 1), (1, 1)),
            dimension_numbers=("NCHW", "OIHW", "NCHW"),
            preferred_element_type=jnp.float32)
        out = out + (bias.reshape(1, -1, 1, 1).astype(jnp.float32)
                     * scale.reshape(1, -1, 1, 1))
    return out.astype(x_nchw.dtype)


if __name__ == "__main__":
    key = jax.random.PRNGKey(0)
    N, Cin, H, W = 2, 4, 16, 16
    Cout = 8

    kx, kwt, kb, kl = jax.random.split(key, 4)
    x = jax.random.normal(kx, (N, Cin, H, W), dtype=jnp.float32)

    # Non-trivial parameters to exercise the kernel math.
    w_rand = jax.random.normal(kwt, (Cout, Cin, KH, KW), dtype=jnp.float32) * 0.1
    b_rand = jax.random.normal(kb, (Cout,), dtype=jnp.float32) * 0.1
    l_rand = jax.random.normal(kl, (Cout,), dtype=jnp.float32) * 0.1

    # (1) f32 compute path vs the exact (PyTorch-semantics) f32 reference.
    got_f32 = jax.block_until_ready(
        conv2d_zeros_forward(x, w_rand, b_rand, l_rand, compute_dtype=jnp.float32))
    want_f32 = _reference_forward(x, w_rand, b_rand, l_rand)
    assert got_f32.shape == (N, Cout, H, W)
    assert jnp.allclose(got_f32, want_f32, atol=1e-4, rtol=1e-4), \
        "f32 kernel mismatch vs reference"

    # (2) default bf16-MXU path vs a numerics-mirrored bf16 reference.
    got_bf16 = jax.block_until_ready(conv2d_zeros_forward(x, w_rand, b_rand, l_rand))
    want_bf16 = _reference_forward(x, w_rand, b_rand, l_rand, compute_dtype=jnp.bfloat16)
    assert jnp.allclose(got_bf16, want_bf16, atol=1e-2, rtol=1e-2), \
        "bf16 kernel mismatch vs bf16-mirrored reference"

    # (3) actual Conv2dZeros deterministic init (zero weights/bias/logs): output == 0.
    w0 = jnp.zeros((Cout, Cin, KH, KW), jnp.float32)
    b0 = jnp.zeros((Cout,), jnp.float32)
    l0 = jnp.zeros((Cout,), jnp.float32)
    out0 = jax.block_until_ready(conv2d_zeros_forward(x, w0, b0, l0))
    assert out0.shape == (N, Cout, H, W)
    assert jnp.allclose(out0, jnp.zeros_like(out0)), "zero-init output must be zero"

    print("KERNEL_OK")
</pallas_src>

<mosaic_0001>
module attributes {stable_mosaic.version = 11 : i64} {
  func.func @_conv2dzeros_kernel(%arg0: i32, %arg1: memref<2x18x128xf32, #tpu.memory_space<vmem>>, %arg2: memref<3x128x128xf32, #tpu.memory_space<vmem>>, %arg3: memref<1x128xf32, #tpu.memory_space<vmem>>, %arg4: memref<32x128xf32, #tpu.memory_space<vmem>>) attributes {dimension_semantics = [#tpu.dimension_semantics<parallel>], iteration_bounds = array<i64: 1>, scalar_prefetch = 0 : i64, scratch_operands = 0 : i64, tpu.core_type = #tpu.core_type<tc>, window_params = [{transform_indices = @transform_0, window_bounds = array<i64: 2, 18, 128>}, {pipeline_mode = #tpu.pipeline_mode<synchronous>, transform_indices = @transform_1, window_bounds = array<i64: 3, 128, 128>}, {pipeline_mode = #tpu.pipeline_mode<synchronous>, transform_indices = @transform_2, window_bounds = array<i64: 1, 128>}, {transform_indices = @transform_3, window_bounds = array<i64: 32, 128>}]} {
    %c0 = arith.constant 0 : index
    %c0_0 = arith.constant 0 : index
    %0 = vector.load %arg3[%c0, %c0_0] : memref<1x128xf32, #tpu.memory_space<vmem>>, vector<1x128xf32>
    %cst = arith.constant 0.000000e+00 : f32
    %1 = vector.broadcast %cst : f32 to vector<16x128xf32>
    %c0_1 = arith.constant 0 : index
    %c0_2 = arith.constant 0 : index
    %c0_3 = arith.constant 0 : index
    %2 = vector.load %arg1[%c0_1, %c0_2, %c0_3] : memref<2x18x128xf32, #tpu.memory_space<vmem>>, vector<1x16x128xf32>
    %3 = vector.shape_cast %2 : vector<1x16x128xf32> to vector<16x128xf32>
    %c0_4 = arith.constant 0 : index
    %c0_5 = arith.constant 0 : index
    %c0_6 = arith.constant 0 : index
    %4 = vector.load %arg2[%c0_4, %c0_5, %c0_6] : memref<3x128x128xf32, #tpu.memory_space<vmem>>, vector<1x128x128xf32>
    %5 = vector.shape_cast %4 : vector<1x128x128xf32> to vector<128x128xf32>
    %cst_7 = arith.constant dense<0.000000e+00> : vector<16x128xf32>
    %6 = tpu.matmul %3, %5, %cst_7 {dimension_numbers = #tpu.dot_dimension_numbers<[1], [0], [0], [1], [0, 0, 1, 1], [], []>} : vector<16x128xf32>, vector<128x128xf32>, vector<16x128xf32> -> vector<16x128xf32>
    %7 = arith.addf %1, %6 : vector<16x128xf32>
    %c0_8 = arith.constant 0 : index
    %c1 = arith.constant 1 : index
    %c0_9 = arith.constant 0 : index
    %8 = vector.load %arg1[%c0_8, %c1, %c0_9] : memref<2x18x128xf32, #tpu.memory_space<vmem>>, vector<1x16x128xf32>
    %9 = vector.shape_cast %8 : vector<1x16x128xf32> to vector<16x128xf32>
    %c1_10 = arith.constant 1 : index
    %c0_11 = arith.constant 0 : index
    %c0_12 = arith.constant 0 : index
    %10 = vector.load %arg2[%c1_10, %c0_11, %c0_12] : memref<3x128x128xf32, #tpu.memory_space<vmem>>, vector<1x128x128xf32>
    %11 = vector.shape_cast %10 : vector<1x128x128xf32> to vector<128x128xf32>
    %cst_13 = arith.constant dense<0.000000e+00> : vector<16x128xf32>
    %12 = tpu.matmul %9, %11, %cst_13 {dimension_numbers = #tpu.dot_dimension_numbers<[1], [0], [0], [1], [0, 0, 1, 1], [], []>} : vector<16x128xf32>, vector<128x128xf32>, vector<16x128xf32> -> vector<16x128xf32>
    %13 = arith.addf %7, %12 : vector<16x128xf32>
    %c0_14 = arith.constant 0 : index
    %c2 = arith.constant 2 : index
    %c0_15 = arith.constant 0 : index
    %14 = vector.load %arg1[%c0_14, %c2, %c0_15] : memref<2x18x128xf32, #tpu.memory_space<vmem>>, vector<1x16x128xf32>
    %15 = vector.shape_cast %14 : vector<1x16x128xf32> to vector<16x128xf32>
    %c2_16 = arith.constant 2 : index
    %c0_17 = arith.constant 0 : index
    %c0_18 = arith.constant 0 : index
    %16 = vector.load %arg2[%c2_16, %c0_17, %c0_18] : memref<3x128x128xf32, #tpu.memory_space<vmem>>, vector<1x128x128xf32>
    %17 = vector.shape_cast %16 : vector<1x128x128xf32> to vector<128x128xf32>
    %cst_19 = arith.constant dense<0.000000e+00> : vector<16x128xf32>
    %18 = tpu.matmul %15, %17, %cst_19 {dimension_numbers = #tpu.dot_dimension_numbers<[1], [0], [0], [1], [0, 0, 1, 1], [], []>} : vector<16x128xf32>, vector<128x128xf32>, vector<16x128xf32> -> vector<16x128xf32>
    %19 = arith.addf %13, %18 : vector<16x128xf32>
    %20 = vector.broadcast %0 : vector<1x128xf32> to vector<16x128xf32>
    %21 = arith.addf %19, %20 : vector<16x128xf32>
    %c0_20 = arith.constant 0 : index
    %c0_21 = arith.constant 0 : index
    %22 = vector.load %arg4[%c0_20, %c0_21] : memref<32x128xf32, #tpu.memory_space<vmem>>, vector<16x128xf32>
    tpu.vector_store %arg4[%c0_20, %c0_21], %21 {strides = array<i32>} : memref<32x128xf32, #tpu.memory_space<vmem>>, vector<16x128xf32>,
    %cst_22 = arith.constant 0.000000e+00 : f32
    %23 = vector.broadcast %cst_22 : f32 to vector<16x128xf32>
    %c1_23 = arith.constant 1 : index
    %c0_24 = arith.constant 0 : index
    %c0_25 = arith.constant 0 : index
    %24 = vector.load %arg1[%c1_23, %c0_24, %c0_25] : memref<2x18x128xf32, #tpu.memory_space<vmem>>, vector<1x16x128xf32>
    %25 = vector.shape_cast %24 : vector<1x16x128xf32> to vector<16x128xf32>
    %c0_26 = arith.constant 0 : index
    %c0_27 = arith.constant 0 : index
    %c0_28 = arith.constant 0 : index
    %26 = vector.load %arg2[%c0_26, %c0_27, %c0_28] : memref<3x128x128xf32, #tpu.memory_space<vmem>>, vector<1x128x128xf32>
    %27 = vector.shape_cast %26 : vector<1x128x128xf32> to vector<128x128xf32>
    %cst_29 = arith.constant dense<0.000000e+00> : vector<16x128xf32>
    %28 = tpu.matmul %25, %27, %cst_29 {dimension_numbers = #tpu.dot_dimension_numbers<[1], [0], [0], [1], [0, 0, 1, 1], [], []>} : vector<16x128xf32>, vector<128x128xf32>, vector<16x128xf32> -> vector<16x128xf32>
    %29 = arith.addf %23, %28 : vector<16x128xf32>
    %c1_30 = arith.constant 1 : index
    %c1_31 = arith.constant 1 : index
    %c0_32 = arith.constant 0 : index
    %30 = vector.load %arg1[%c1_30, %c1_31, %c0_32] : memref<2x18x128xf32, #tpu.memory_space<vmem>>, vector<1x16x128xf32>
    %31 = vector.shape_cast %30 : vector<1x16x128xf32> to vector<16x128xf32>
    %c1_33 = arith.constant 1 : index
    %c0_34 = arith.constant 0 : index
    %c0_35 = arith.constant 0 : index
    %32 = vector.load %arg2[%c1_33, %c0_34, %c0_35] : memref<3x128x128xf32, #tpu.memory_space<vmem>>, vector<1x128x128xf32>
    %33 = vector.shape_cast %32 : vector<1x128x128xf32> to vector<128x128xf32>
    %cst_36 = arith.constant dense<0.000000e+00> : vector<16x128xf32>
    %34 = tpu.matmul %31, %33, %cst_36 {dimension_numbers = #tpu.dot_dimension_numbers<[1], [0], [0], [1], [0, 0, 1, 1], [], []>} : vector<16x128xf32>, vector<128x128xf32>, vector<16x128xf32> -> vector<16x128xf32>
    %35 = arith.addf %29, %34 : vector<16x128xf32>
    %c1_37 = arith.constant 1 : index
    %c2_38 = arith.constant 2 : index
    %c0_39 = arith.constant 0 : index
    %36 = vector.load %arg1[%c1_37, %c2_38, %c0_39] : memref<2x18x128xf32, #tpu.memory_space<vmem>>, vector<1x16x128xf32>
    %37 = vector.shape_cast %36 : vector<1x16x128xf32> to vector<16x128xf32>
    %c2_40 = arith.constant 2 : index
    %c0_41 = arith.constant 0 : index
    %c0_42 = arith.constant 0 : index
    %38 = vector.load %arg2[%c2_40, %c0_41, %c0_42] : memref<3x128x128xf32, #tpu.memory_space<vmem>>, vector<1x128x128xf32>
    %39 = vector.shape_cast %38 : vector<1x128x128xf32> to vector<128x128xf32>
    %cst_43 = arith.constant dense<0.000000e+00> : vector<16x128xf32>
    %40 = tpu.matmul %37, %39, %cst_43 {dimension_numbers = #tpu.dot_dimension_numbers<[1], [0], [0], [1], [0, 0, 1, 1], [], []>} : vector<16x128xf32>, vector<128x128xf32>, vector<16x128xf32> -> vector<16x128xf32>
    %41 = arith.addf %35, %40 : vector<16x128xf32>
    %42 = vector.broadcast %0 : vector<1x128xf32> to vector<16x128xf32>
    %43 = arith.addf %41, %42 : vector<16x128xf32>
    %c16 = arith.constant 16 : index
    %c0_44 = arith.constant 0 : index
    %44 = vector.load %arg4[%c16, %c0_44] : memref<32x128xf32, #tpu.memory_space<vmem>>, vector<16x128xf32>
    tpu.vector_store %arg4[%c16, %c0_44], %43 {strides = array<i32>} : memref<32x128xf32, #tpu.memory_space<vmem>>, vector<16x128xf32>,
    return
  }
  func.func @transform_0(%arg0: i32) -> (i32, i32, i32) {
    %c0_i32 = arith.constant 0 : i32
    %c0_i32_0 = arith.constant 0 : i32
    %c0_i32_1 = arith.constant 0 : i32
    return %arg0, %c0_i32, %c0_i32_0 : i32, i32, i32
  }
  func.func @transform_1(%arg0: i32) -> (i32, i32, i32) {
    %c0_i32 = arith.constant 0 : i32
    %c0_i32_0 = arith.constant 0 : i32
    %c0_i32_1 = arith.constant 0 : i32
    %c0_i32_2 = arith.constant 0 : i32
    return %c0_i32, %c0_i32_0, %c0_i32_1 : i32, i32, i32
  }
  func.func @transform_2(%arg0: i32) -> (i32, i32) {
    %c0_i32 = arith.constant 0 : i32
    %c0_i32_0 = arith.constant 0 : i32
    %c0_i32_1 = arith.constant 0 : i32
    return %c0_i32, %c0_i32_0 : i32, i32
  }
  func.func @transform_3(%arg0: i32) -> (i32, i32) {
    %c0_i32 = arith.constant 0 : i32
    %c0_i32_0 = arith.constant 0 : i32
    return %arg0, %c0_i32 : i32, i32
  }
}

module attributes {stable_mosaic.version = 11 : i64} {
  func.func @_conv2dzeros_kernel(%arg0: i32, %arg1: memref<2x18x128xf32, #tpu.memory_space<vmem>>, %arg2: memref<3x128x128xf32, #tpu.memory_space<vmem>>, %arg3: memref<1x128xf32, #tpu.memory_space<vmem>>, %arg4: memref<32x128xf32, #tpu.memory_space<vmem>>) attributes {dimension_semantics = [#tpu.dimension_semantics<parallel>], iteration_bounds = array<i64: 1>, scalar_prefetch = 0 : i64, scratch_operands = 0 : i64, tpu.core_type = #tpu.core_type<tc>, window_params = [{transform_indices = @transform_0, window_bounds = array<i64: 2, 18, 128>}, {pipeline_mode = #tpu.pipeline_mode<synchronous>, transform_indices = @transform_1, window_bounds = array<i64: 3, 128, 128>}, {pipeline_mode = #tpu.pipeline_mode<synchronous>, transform_indices = @transform_2, window_bounds = array<i64: 1, 128>}, {transform_indices = @transform_3, window_bounds = array<i64: 32, 128>}]} {
    %c0 = arith.constant 0 : index
    %c0_0 = arith.constant 0 : index
    %0 = vector.load %arg3[%c0, %c0_0] : memref<1x128xf32, #tpu.memory_space<vmem>>, vector<1x128xf32>
    %cst = arith.constant 0.000000e+00 : f32
    %1 = vector.broadcast %cst : f32 to vector<16x128xf32>
    %c0_1 = arith.constant 0 : index
    %c0_2 = arith.constant 0 : index
    %c0_3 = arith.constant 0 : index
    %2 = vector.load %arg1[%c0_1, %c0_2, %c0_3] : memref<2x18x128xf32, #tpu.memory_space<vmem>>, vector<1x16x128xf32>
    %3 = vector.shape_cast %2 : vector<1x16x128xf32> to vector<16x128xf32>
    %c0_4 = arith.constant 0 : index
    %c0_5 = arith.constant 0 : index
    %c0_6 = arith.constant 0 : index
    %4 = vector.load %arg2[%c0_4, %c0_5, %c0_6] : memref<3x128x128xf32, #tpu.memory_space<vmem>>, vector<1x128x128xf32>
    %5 = vector.shape_cast %4 : vector<1x128x128xf32> to vector<128x128xf32>
    %cst_7 = arith.constant dense<0.000000e+00> : vector<16x128xf32>
    %6 = tpu.matmul %3, %5, %cst_7 {dimension_numbers = #tpu.dot_dimension_numbers<[1], [0], [0], [1], [0, 0, 1, 1], [], []>} : vector<16x128xf32>, vector<128x128xf32>, vector<16x128xf32> -> vector<16x128xf32>
    %7 = arith.addf %1, %6 : vector<16x128xf32>
    %c0_8 = arith.constant 0 : index
    %c1 = arith.constant 1 : index
    %c0_9 = arith.constant 0 : index
    %8 = vector.load %arg1[%c0_8, %c1, %c0_9] : memref<2x18x128xf32, #tpu.memory_space<vmem>>, vector<1x16x128xf32>
    %9 = vector.shape_cast %8 : vector<1x16x128xf32> to vector<16x128xf32>
    %c1_10 = arith.constant 1 : index
    %c0_11 = arith.constant 0 : index
    %c0_12 = arith.constant 0 : index
    %10 = vector.load %arg2[%c1_10, %c0_11, %c0_12] : memref<3x128x128xf32, #tpu.memory_space<vmem>>, vector<1x128x128xf32>
    %11 = vector.shape_cast %10 : vector<1x128x128xf32> to vector<128x128xf32>
    %cst_13 = arith.constant dense<0.000000e+00> : vector<16x128xf32>
    %12 = tpu.matmul %9, %11, %cst_13 {dimension_numbers = #tpu.dot_dimension_numbers<[1], [0], [0], [1], [0, 0, 1, 1], [], []>} : vector<16x128xf32>, vector<128x128xf32>, vector<16x128xf32> -> vector<16x128xf32>
    %13 = arith.addf %7, %12 : vector<16x128xf32>
    %c0_14 = arith.constant 0 : index
    %c2 = arith.constant 2 : index
    %c0_15 = arith.constant 0 : index
    %14 = vector.load %arg1[%c0_14, %c2, %c0_15] : memref<2x18x128xf32, #tpu.memory_space<vmem>>, vector<1x16x128xf32>
    %15 = vector.shape_cast %14 : vector<1x16x128xf32> to vector<16x128xf32>
    %c2_16 = arith.constant 2 : index
    %c0_17 = arith.constant 0 : index
    %c0_18 = arith.constant 0 : index
    %16 = vector.load %arg2[%c2_16, %c0_17, %c0_18] : memref<3x128x128xf32, #tpu.memory_space<vmem>>, vector<1x128x128xf32>
    %17 = vector.shape_cast %16 : vector<1x128x128xf32> to vector<128x128xf32>
    %cst_19 = arith.constant dense<0.000000e+00> : vector<16x128xf32>
    %18 = tpu.matmul %15, %17, %cst_19 {dimension_numbers = #tpu.dot_dimension_numbers<[1], [0], [0], [1], [0, 0, 1, 1], [], []>} : vector<16x128xf32>, vector<128x128xf32>, vector<16x128xf32> -> vector<16x128xf32>
    %19 = arith.addf %13, %18 : vector<16x128xf32>
    %20 = vector.broadcast %0 : vector<1x128xf32> to vector<16x128xf32>
    %21 = arith.addf %19, %20 : vector<16x128xf32>
    %c0_20 = arith.constant 0 : index
    %c0_21 = arith.constant 0 : index
    %22 = vector.load %arg4[%c0_20, %c0_21] : memref<32x128xf32, #tpu.memory_space<vmem>>, vector<16x128xf32>
    tpu.vector_store %arg4[%c0_20, %c0_21], %21 {strides = array<i32>} : memref<32x128xf32, #tpu.memory_space<vmem>>, vector<16x128xf32>,
    %cst_22 = arith.constant 0.000000e+00 : f32
    %23 = vector.broadcast %cst_22 : f32 to vector<16x128xf32>
    %c1_23 = arith.constant 1 : index
    %c0_24 = arith.constant 0 : index
    %c0_25 = arith.constant 0 : index
    %24 = vector.load %arg1[%c1_23, %c0_24, %c0_25] : memref<2x18x128xf32, #tpu.memory_space<vmem>>, vector<1x16x128xf32>
    %25 = vector.shape_cast %24 : vector<1x16x128xf32> to vector<16x128xf32>
    %c0_26 = arith.constant 0 : index
    %c0_27 = arith.constant 0 : index
    %c0_28 = arith.constant 0 : index
    %26 = vector.load %arg2[%c0_26, %c0_27, %c0_28] : memref<3x128x128xf32, #tpu.memory_space<vmem>>, vector<1x128x128xf32>
    %27 = vector.shape_cast %26 : vector<1x128x128xf32> to vector<128x128xf32>
    %cst_29 = arith.constant dense<0.000000e+00> : vector<16x128xf32>
    %28 = tpu.matmul %25, %27, %cst_29 {dimension_numbers = #tpu.dot_dimension_numbers<[1], [0], [0], [1], [0, 0, 1, 1], [], []>} : vector<16x128xf32>, vector<128x128xf32>, vector<16x128xf32> -> vector<16x128xf32>
    %29 = arith.addf %23, %28 : vector<16x128xf32>
    %c1_30 = arith.constant 1 : index
    %c1_31 = arith.constant 1 : index
    %c0_32 = arith.constant 0 : index
    %30 = vector.load %arg1[%c1_30, %c1_31, %c0_32] : memref<2x18x128xf32, #tpu.memory_space<vmem>>, vector<1x16x128xf32>
    %31 = vector.shape_cast %30 : vector<1x16x128xf32> to vector<16x128xf32>
    %c1_33 = arith.constant 1 : index
    %c0_34 = arith.constant 0 : index
    %c0_35 = arith.constant 0 : index
    %32 = vector.load %arg2[%c1_33, %c0_34, %c0_35] : memref<3x128x128xf32, #tpu.memory_space<vmem>>, vector<1x128x128xf32>
    %33 = vector.shape_cast %32 : vector<1x128x128xf32> to vector<128x128xf32>
    %cst_36 = arith.constant dense<0.000000e+00> : vector<16x128xf32>
    %34 = tpu.matmul %31, %33, %cst_36 {dimension_numbers = #tpu.dot_dimension_numbers<[1], [0], [0], [1], [0, 0, 1, 1], [], []>} : vector<16x128xf32>, vector<128x128xf32>, vector<16x128xf32> -> vector<16x128xf32>
    %35 = arith.addf %29, %34 : vector<16x128xf32>
    %c1_37 = arith.constant 1 : index
    %c2_38 = arith.constant 2 : index
    %c0_39 = arith.constant 0 : index
    %36 = vector.load %arg1[%c1_37, %c2_38, %c0_39] : memref<2x18x128xf32, #tpu.memory_space<vmem>>, vector<1x16x128xf32>
    %37 = vector.shape_cast %36 : vector<1x16x128xf32> to vector<16x128xf32>
    %c2_40 = arith.constant 2 : index
    %c0_41 = arith.constant 0 : index
    %c0_42 = arith.constant 0 : index
    %38 = vector.load %arg2[%c2_40, %c0_41, %c0_42] : memref<3x128x128xf32, #tpu.memory_space<vmem>>, vector<1x128x128xf32>
    %39 = vector.shape_cast %38 : vector<1x128x128xf32> to vector<128x128xf32>
    %cst_43 = arith.constant dense<0.000000e+00> : vector<16x128xf32>
    %40 = tpu.matmul %37, %39, %cst_43 {dimension_numbers = #tpu.dot_dimension_numbers<[1], [0], [0], [1], [0, 0, 1, 1], [], []>} : vector<16x128xf32>, vector<128x128xf32>, vector<16x128xf32> -> vector<16x128xf32>
    %41 = arith.addf %35, %40 : vector<16x128xf32>
    %42 = vector.broadcast %0 : vector<1x128xf32> to vector<16x128xf32>
    %43 = arith.addf %41, %42 : vector<16x128xf32>
    %c16 = arith.constant 16 : index
    %c0_44 = arith.constant 0 : index
    %44 = vector.load %arg4[%c16, %c0_44] : memref<32x128xf32, #tpu.memory_space<vmem>>, vector<16x128xf32>
    tpu.vector_store %arg4[%c16, %c0_44], %43 {strides = array<i32>} : memref<32x128xf32, #tpu.memory_space<vmem>>, vector<16x128xf32>,
    return
  }
  func.func @transform_0(%arg0: i32) -> (i32, i32, i32) {
    %c0_i32 = arith.constant 0 : i32
    %c0_i32_0 = arith.constant 0 : i32
    %c0_i32_1 = arith.constant 0 : i32
    return %arg0, %c0_i32, %c0_i32_0 : i32, i32, i32
  }
  func.func @transform_1(%arg0: i32) -> (i32, i32, i32) {
    %c0_i32 = arith.constant 0 : i32
    %c0_i32_0 = arith.constant 0 : i32
    %c0_i32_1 = arith.constant 0 : i32
    %c0_i32_2 = arith.constant 0 : i32
    return %c0_i32, %c0_i32_0, %c0_i32_1 : i32, i32, i32
  }
  func.func @transform_2(%arg0: i32) -> (i32, i32) {
    %c0_i32 = arith.constant 0 : i32
    %c0_i32_0 = arith.constant 0 : i32
    %c0_i32_1 = arith.constant 0 : i32
    return %c0_i32, %c0_i32_0 : i32, i32
  }
  func.func @transform_3(%arg0: i32) -> (i32, i32) {
    %c0_i32 = arith.constant 0 : i32
    %c0_i32_0 = arith.constant 0 : i32
    return %arg0, %c0_i32 : i32, i32
  }
}

</mosaic_0001>

<bundles_post_ra>
// kernel: tpu_custom_call.1
= control target key start
LH: loop header
LB: loop body
LE: loop exit
PB: predicated region body
PF: predicated region fallthrough
CT: control target
= control target key end

     0   :  { %8 = vsyncpa [#allocation3], 0  ;;  %s645_s0 = inlined_call_operand.vmem [shape: f32[2,18,128], index: 0, kind: input, shape index: {}]   ;;  %s646_s1 = inlined_call_operand.hbm [shape: f32[3,128,128], index: 1, kind: input, shape index: {}]   ;;  %s647_s2 = inlined_call_operand.vmem [shape: f32[1,128], index: 2, kind: input, shape index: {}]   ;;  %s648_s3 = inlined_call_operand.hbm [shape: f32[32,128], index: 3, kind: output, shape index: {}]  }
   0x1   :  { %9 = vsyncpa [#allocation4], 0  ;;  %s16_s14 = sshll.u32 %s646_s1, 4  ;;  %s410_s15 = smov [#allocation2]   ;;  %s17_s14 = int_to_ptr.hbm [resolvable:$true] %s16_s14 }
   0x2   :  { %s18_s16 = sshll.u32 %s410_s15, 4  ;;  %s411_s17 = smov 128   ;;  %s19_s16 = int_to_ptr.vmem [resolvable:$true] %s18_s16 }
   0x3   :  { %s412_s18 = smov 8  }
   0x4   :  { %24 = dma.hbm_to_vmem [thread:$0]  %s17_s14, 6144, %s19_s16, [#allocation3], %s411_s17, %s411_s17, %s412_s18  }
   0x5   :  { %406 = dma.done.wait [#allocation3], 6144  }
   0x6   :  { %407 = vsyncadd [#allocation3], 4294961152  ;;  %v68_v0 = vld [vmem:[#allocation2 + $0xf8] sm:$0xff]  ;;  %v67_v2 = vld [vmem:[#allocation2 + $0xf0] sm:$0xff]  ;;  %s302_s20 = sshll.u32 %s648_s3, 4  ;;  %s303_s20 = int_to_ptr.hbm [resolvable:$true] %s302_s20 }
   0x7   :  { %v440_v1 = vld [vmem:[#allocation2 + $0x178] sm:$0xff]  ;;  %69 = vmatpush.msra.mxu0 %v68_v0  ;;  %v445_v4 = vld [vmem:[#allocation2 + $0x170] sm:$0xff]  ;;  %203 = vmatpush.msra.mxu3 %v68_v0  ;;  %v66_v5 = vld [vmem:[#allocation2 + $0xe8] sm:$0xff] }
   0x8   :  { %134 = vmatpush.msra.mxu2 %v440_v1  ;;  %v443_v3 = vld [vmem:[#allocation2 + $0x78] sm:$0xff]  ;;  %v448_v6 = vld [vmem:[#allocation2 + $0x70] sm:$0xff]  ;;  %v450_v7 = vld [vmem:[#allocation2 + $0x168] sm:$0xff] }
   0x9   :  { %92 = vmatpush.msra.mxu1 %v443_v3  ;;  %70 = vmatpush.msra.mxu0 %v67_v2  ;;  %v453_v8 = vld [vmem:[#allocation2 + $0x68] sm:$0xff]  ;;  %v65_v9 = vld [vmem:[#allocation2 + $0xe0] sm:$0xff]  ;;  %v64_v12 = vld [vmem:[#allocation2 + $0xd8] sm:$0xff] }
   0xa   :  { %135 = vmatpush.msra.mxu2 %v445_v4  ;;  %204 = vmatpush.msra.mxu3 %v67_v2  ;;  %v456_v10 = vld [vmem:[#allocation2 + $0x160] sm:$0xff]  ;;  %v462_v13 = vld [vmem:[#allocation2 + $0x158] sm:$0xff]  ;;  %v63_v15 = vld [vmem:[#allocation2 + $0xd0] sm:$0xff] }
   0xb   :  { %93 = vmatpush.msra.mxu1 %v448_v6  ;;  %71 = vmatpush.msra.mxu0 %v66_v5  ;;  %v459_v11 = vld [vmem:[#allocation2 + $0x60] sm:$0xff]  ;;  %v465_v14 = vld [vmem:[#allocation2 + $0x58] sm:$0xff]  ;;  %v468_v16 = vld [vmem:[#allocation2 + $0x150] sm:$0xff] }
   0xc   :  { %136 = vmatpush.msra.mxu2 %v450_v7  ;;  %205 = vmatpush.msra.mxu3 %v66_v5  ;;  %v471_v17 = vld [vmem:[#allocation2 + $0x50] sm:$0xff]  ;;  %v62_v18 = vld [vmem:[#allocation2 + $0xc8] sm:$0xff]  ;;  %v61_v21 = vld [vmem:[#allocation2 + $0xc0] sm:$0xff] }
   0xd   :  { %94 = vmatpush.msra.mxu1 %v453_v8  ;;  %72 = vmatpush.msra.mxu0 %v65_v9  ;;  %v474_v19 = vld [vmem:[#allocation2 + $0x148] sm:$0xff]  ;;  %v480_v22 = vld [vmem:[#allocation2 + $0x140] sm:$0xff]  ;;  %v60_v24 = vld [vmem:[#allocation2 + $0xb8] sm:$0xff] }
   0xe   :  { %137 = vmatpush.msra.mxu2 %v456_v10  ;;  %206 = vmatpush.msra.mxu3 %v65_v9  ;;  %v477_v20 = vld [vmem:[#allocation2 + $0x48] sm:$0xff]  ;;  %v483_v23 = vld [vmem:[#allocation2 + $0x40] sm:$0xff]  ;;  %v486_v25 = vld [vmem:[#allocation2 + $0x138] sm:$0xff] }
   0xf   :  { %95 = vmatpush.msra.mxu1 %v459_v11  ;;  %73 = vmatpush.msra.mxu0 %v64_v12  ;;  %v489_v26 = vld [vmem:[#allocation2 + $0x38] sm:$0xff]  ;;  %v59_v27 = vld [vmem:[#allocation2 + $0xb0] sm:$0xff]  ;;  %v58_v30 = vld [vmem:[#allocation2 + $0xa8] sm:$0xff] }
  0x10   :  { %138 = vmatpush.msra.mxu2 %v462_v13  ;;  %207 = vmatpush.msra.mxu3 %v64_v12  ;;  %v492_v28 = vld [vmem:[#allocation2 + $0x130] sm:$0xff]  ;;  %v498_v31 = vld [vmem:[#allocation2 + $0x128] sm:$0xff]  ;;  %v57_v33 = vld [vmem:[#allocation2 + $0xa0] sm:$0xff] }
  0x11   :  { %96 = vmatpush.msra.mxu1 %v465_v14  ;;  %74 = vmatpush.msra.mxu0 %v63_v15  ;;  %v495_v29 = vld [vmem:[#allocation2 + $0x30] sm:$0xff]  ;;  %v501_v32 = vld [vmem:[#allocation2 + $0x28] sm:$0xff]  ;;  %v504_v34 = vld [vmem:[#allocation2 + $0x120] sm:$0xff] }
  0x12   :  { %139 = vmatpush.msra.mxu2 %v468_v16  ;;  %208 = vmatpush.msra.mxu3 %v63_v15  ;;  %v507_v35 = vld [vmem:[#allocation2 + $0x20] sm:$0xff]  ;;  %v56_v36 = vld [vmem:[#allocation2 + $0x98] sm:$0xff]  ;;  %v55_v39 = vld [vmem:[#allocation2 + $0x90] sm:$0xff] }
  0x13   :  { %97 = vmatpush.msra.mxu1 %v471_v17  ;;  %75 = vmatpush.msra.mxu0 %v62_v18  ;;  %v510_v37 = vld [vmem:[#allocation2 + $0x118] sm:$0xff]  ;;  %v516_v40 = vld [vmem:[#allocation2 + $0x110] sm:$0xff]  ;;  %v54_v42 = vld [vmem:[#allocation2 + $0x88] sm:$0xff] }
  0x14   :  { %140 = vmatpush.msra.mxu2 %v474_v19  ;;  %209 = vmatpush.msra.mxu3 %v62_v18  ;;  %v513_v38 = vld [vmem:[#allocation2 + $0x18] sm:$0xff]  ;;  %v519_v41 = vld [vmem:[#allocation2 + $0x10] sm:$0xff]  ;;  %v522_v43 = vld [vmem:[#allocation2 + $0x108] sm:$0xff] }
  0x15   :  { %98 = vmatpush.msra.mxu1 %v477_v20  ;;  %76 = vmatpush.msra.mxu0 %v61_v21  ;;  %v525_v44 = vld [vmem:[#allocation2 + $0x8] sm:$0xff]  ;;  %v53_v45 = vld [vmem:[#allocation2 + $0x80] sm:$0xff]  ;;  %v315_v56 = vld [vmem:[%s645_s0 + $0x18] sm:$0xff] }
  0x16   :  { %141 = vmatpush.msra.mxu2 %v480_v22  ;;  %210 = vmatpush.msra.mxu3 %v61_v21  ;;  %v528_v46 = vld [vmem:[#allocation2 + $0x100] sm:$0xff]  ;;  %v51_v52 = vld [vmem:[%s645_s0 + $0x9] sm:$0xff] }
  0x17   :  { %99 = vmatpush.msra.mxu1 %v483_v23  ;;  %77 = vmatpush.msra.mxu0 %v60_v24  ;;  %v532_v47 = vld [vmem:[#allocation2] sm:$0xff]  ;;  %v116_v53 = vld [vmem:[%s645_s0 + $0xa] sm:$0xff] }
  0x18   :  { %142 = vmatpush.msra.mxu2 %v486_v25  ;;  %211 = vmatpush.msra.mxu3 %v60_v24  ;;  %v50_v48 = vld [vmem:[%s645_s0 + $0x1] sm:$0xff]  ;;  %v317_v51 = vld [vmem:[%s645_s0 + $0x19] sm:$0xff] }
  0x19   :  { %100 = vmatpush.msra.mxu1 %v489_v26  ;;  %78 = vmatpush.msra.mxu0 %v59_v27  ;;  %v115_v49 = vld [vmem:[%s645_s0 + $0x2] sm:$0xff]  ;;  %v319_v58 = vld [vmem:[%s645_s0 + $0x1a] sm:$0xff] }
  0x1a   :  { %143 = vmatpush.msra.mxu2 %v492_v28  ;;  %212 = vmatpush.msra.mxu3 %v59_v27  ;;  %v32_v50 = vld [vmem:[%s645_s0] sm:$0xff]  ;;  %v33_v54 = vld [vmem:[%s645_s0 + $0x8] sm:$0xff] }
  0x1b   :  { %101 = vmatpush.msra.mxu1 %v495_v29  ;;  %79 = vmatpush.msra.mxu0 %v58_v30  ;;  %v318_v55 = vld [vmem:[%s645_s0 + $0x21] sm:$0xff]  ;;  %v357_v63 = vld [vmem:[%s647_s2] ss:$0 sm:$0xff] }
  0x1c   :  { %144 = vmatpush.msra.mxu2 %v498_v31  ;;  %213 = vmatpush.msra.mxu3 %v58_v30  ;;  %v316_v57 = vld [vmem:[%s645_s0 + $0x20] sm:$0xff] }
  0x1d   :  { %102 = vmatpush.msra.mxu1 %v501_v32  ;;  %80 = vmatpush.msra.mxu0 %v57_v33  ;;  %v320_v59 = vld [vmem:[%s645_s0 + $0x22] sm:$0xff]  ;;  %s413_s0 = smov [#allocation5]  }
  0x1e   :  { %145 = vmatpush.msra.mxu2 %v504_v34  ;;  %214 = vmatpush.msra.mxu3 %v57_v33  ;;  %s300_s2 = sshll.u32 %s413_s0, 4  ;;  %s301_s2 = int_to_ptr.vmem [resolvable:$true] %s300_s2 }
  0x1f   :  { %103 = vmatpush.msra.mxu1 %v507_v35  ;;  %81 = vmatpush.msra.mxu0 %v56_v36 }
  0x20   :  { %146 = vmatpush.msra.mxu2 %v510_v37  ;;  %215 = vmatpush.msra.mxu3 %v56_v36 }
  0x21   :  { %104 = vmatpush.msra.mxu1 %v513_v38  ;;  %82 = vmatpush.msra.mxu0 %v55_v39 }
  0x22   :  { %147 = vmatpush.msra.mxu2 %v516_v40  ;;  %216 = vmatpush.msra.mxu3 %v55_v39 }
  0x23   :  { %105 = vmatpush.msra.mxu1 %v519_v41  ;;  %83 = vmatpush.msra.mxu0 %v54_v42 }
  0x24   :  { %148 = vmatpush.msra.mxu2 %v522_v43  ;;  %217 = vmatpush.msra.mxu3 %v54_v42 }
  0x25   :  { %106 = vmatpush.msra.mxu1 %v525_v44  ;;  %84 = vmatpush.msra.mxu0 %v53_v45 }
  0x26   :  { %149 = vmatpush.msra.mxu2 %v528_v46  ;;  %218 = vmatpush.msra.mxu3 %v53_v45 }
  0x27   :  { %226 = vmatpush.msrb.mxu0 %v443_v3  ;;  %107 = vmatpush.msra.mxu1 %v532_v47 }
  0x28   :  { %321 = vmatpush.msrb.mxu2 %v443_v3  ;;  %337 = vmatpush.msrb.mxu3 %v440_v1 }
  0x29   :  { %227 = vmatpush.msrb.mxu0 %v448_v6  ;;  %267 = vmatpush.msrb.mxu1 %v440_v1 }
  0x2a   :  { %322 = vmatpush.msrb.mxu2 %v448_v6  ;;  %338 = vmatpush.msrb.mxu3 %v445_v4 }
  0x2b   :  { %228 = vmatpush.msrb.mxu0 %v453_v8  ;;  %268 = vmatpush.msrb.mxu1 %v445_v4 }
  0x2c   :  { %323 = vmatpush.msrb.mxu2 %v453_v8  ;;  %339 = vmatpush.msrb.mxu3 %v450_v7 }
  0x2d   :  { %229 = vmatpush.msrb.mxu0 %v459_v11  ;;  %269 = vmatpush.msrb.mxu1 %v450_v7 }
  0x2e   :  { %324 = vmatpush.msrb.mxu2 %v459_v11  ;;  %340 = vmatpush.msrb.mxu3 %v456_v10 }
  0x2f   :  { %230 = vmatpush.msrb.mxu0 %v465_v14  ;;  %270 = vmatpush.msrb.mxu1 %v456_v10 }
  0x30   :  { %325 = vmatpush.msrb.mxu2 %v465_v14  ;;  %341 = vmatpush.msrb.mxu3 %v462_v13 }
  0x31   :  { %231 = vmatpush.msrb.mxu0 %v471_v17  ;;  %271 = vmatpush.msrb.mxu1 %v462_v13 }
  0x32   :  { %326 = vmatpush.msrb.mxu2 %v471_v17  ;;  %342 = vmatpush.msrb.mxu3 %v468_v16 }
  0x33   :  { %232 = vmatpush.msrb.mxu0 %v477_v20  ;;  %272 = vmatpush.msrb.mxu1 %v468_v16 }
  0x34   :  { %327 = vmatpush.msrb.mxu2 %v477_v20  ;;  %343 = vmatpush.msrb.mxu3 %v474_v19 }
  0x35   :  { %233 = vmatpush.msrb.mxu0 %v483_v23  ;;  %273 = vmatpush.msrb.mxu1 %v474_v19 }
  0x36   :  { %328 = vmatpush.msrb.mxu2 %v483_v23  ;;  %85 = vmatmul.f32.vlgmr.msra.gmra.mxu0 %v50_v48 }
  0x37   :  { %150 = vmatmul.f32.vlgmr.msra.gmra.mxu2 %v115_v49  ;;  %234 = vmatpush.msrb.mxu0 %v489_v26 }
  0x38   :  { %329 = vmatpush.msrb.mxu2 %v489_v26  ;;  %274 = vmatpush.msrb.mxu1 %v480_v22 }
  0x39   :  { %344 = vmatpush.msrb.mxu3 %v480_v22  ;;  %108 = vmatmul.f32.vlgmr.msra.gmra.mxu1 %v32_v50 }
  0x3a   :  { %219 = vmatmul.f32.vlgmr.msra.gmra.mxu3 %v317_v51  ;;  %235 = vmatpush.msrb.mxu0 %v495_v29 }
  0x3b   :  { %330 = vmatpush.msrb.mxu2 %v495_v29  ;;  %275 = vmatpush.msrb.mxu1 %v486_v25 }
  0x3c   :  { %345 = vmatpush.msrb.mxu3 %v486_v25  ;;  %236 = vmatpush.msrb.mxu0 %v501_v32 }
  0x3d   :  { %331 = vmatpush.msrb.mxu2 %v501_v32  ;;  %276 = vmatpush.msrb.mxu1 %v492_v28 }
  0x3e   :  { %346 = vmatpush.msrb.mxu3 %v492_v28  ;;  %237 = vmatpush.msrb.mxu0 %v507_v35 }
  0x3f   :  { %332 = vmatpush.msrb.mxu2 %v507_v35  ;;  %277 = vmatpush.msrb.mxu1 %v498_v31 }
  0x40   :  { %347 = vmatpush.msrb.mxu3 %v498_v31  ;;  %88 = vmatmul.f32.gmra.mxu0 %v51_v52 }
  0x41   :  { %153 = vmatmul.f32.gmra.mxu2 %v116_v53  ;;  %238 = vmatpush.msrb.mxu0 %v513_v38 }
  0x42   :  { %333 = vmatpush.msrb.mxu2 %v513_v38  ;;  %278 = vmatpush.msrb.mxu1 %v504_v34 }
  0x43   :  { %348 = vmatpush.msrb.mxu3 %v504_v34  ;;  %111 = vmatmul.f32.gmra.mxu1 %v33_v54 }
  0x44   :  { %222 = vmatmul.f32.gmra.mxu3 %v318_v55  ;;  %239 = vmatpush.msrb.mxu0 %v519_v41 }
  0x45   :  { %334 = vmatpush.msrb.mxu2 %v519_v41  ;;  %279 = vmatpush.msrb.mxu1 %v510_v37 }
  0x46   :  { %349 = vmatpush.msrb.mxu3 %v510_v37  ;;  %240 = vmatpush.msrb.mxu0 %v525_v44 }
  0x47   :  { %335 = vmatpush.msrb.mxu2 %v525_v44  ;;  %280 = vmatpush.msrb.mxu1 %v516_v40 }
  0x48   :  { %350 = vmatpush.msrb.mxu3 %v516_v40  ;;  %241 = vmatpush.msrb.mxu0 %v532_v47 }
  0x49   :  { %336 = vmatpush.msrb.mxu2 %v532_v47  ;;  %281 = vmatpush.msrb.mxu1 %v522_v43 }
  0x4a   :  { %351 = vmatpush.msrb.mxu3 %v522_v43  ;;  %242 = vmatmul.f32.vlgmr.msrb.gmra.mxu0 %v315_v56 }
  0x4b   :  { %245 = vmatmul.f32.vlgmr.msrb.gmra.mxu2 %v316_v57  ;;  %282 = vmatpush.msrb.mxu1 %v528_v46 }
  0x4c   :  { %352 = vmatpush.msrb.mxu3 %v528_v46  ;;  %283 = vmatmul.f32.vlgmr.msrb.gmra.mxu1 %v319_v58 }
  0x4d   :  { %286 = vmatmul.f32.vlgmr.msrb.gmra.mxu3 %v320_v59 }
  0xb3   :  { %v86_v60 = vpop.f32.mrf.mxu0 }
  0xb6   :  { %v109_v61 = vpop.f32.mrf.mxu1 }
  0xb7   :  { %v110_v62 = vadd.f32 %v109_v61, %v86_v60 }
  0xba   :  { %v151_v0 = vpop.f32.mrf.mxu2 }
  0xbb   :  { %v157_v1 = vadd.f32 %v151_v0, %v110_v62 }
  0xbd   :  { %v162_v2 = vadd.f32 %v357_v63, %v157_v1  ;;  %v220_v3 = vpop.f32.mrf.mxu3  ;;  %v89_v4 = vpop.f32.mrf.mxu0 }
  0xbf   :  { %164 = vst [vmem:[#allocation5] sm:$0xff] %v162_v2 }
  0xc0   :  { %v112_v5 = vpop.f32.mrf.mxu1 }
  0xc1   :  { %v113_v6 = vadd.f32 %v112_v5, %v89_v4 }
  0xc4   :  { %v154_v7 = vpop.f32.mrf.mxu2 }
  0xc5   :  { %v158_v8 = vadd.f32 %v154_v7, %v113_v6 }
  0xc7   :  { %v163_v9 = vadd.f32 %v357_v63, %v158_v8  ;;  %v223_v10 = vpop.f32.mrf.mxu3  ;;  %v243_v11 = vpop.f32.mrf.mxu0 }
  0xc8   :  { %v244_v12 = vadd.f32 %v243_v11, %v220_v3 }
  0xc9   :  { %165 = vst [vmem:[#allocation5 + $0x8] sm:$0xff] %v163_v9  ;;  %v284_v13 = vpop.f32.mrf.mxu1 }
  0xca   :  { %v290_v14 = vadd.f32 %v284_v13, %v244_v12 }
  0xcc   :  { %v292_v15 = vadd.f32 %v357_v63, %v290_v14 }
  0xce   :  { %v246_v16 = vpop.f32.mrf.mxu2  ;;  %294 = vst [vmem:[#allocation5 + $0x10] sm:$0xff] %v292_v15 }
  0xcf   :  { %v247_v17 = vadd.f32 %v246_v16, %v223_v10 }
  0xd0   :  { %v287_v18 = vpop.f32.mrf.mxu3 }
  0xd1   :  { %v291_v19 = vadd.f32 %v287_v18, %v247_v17 }
  0xd3   :  { %v293_v20 = vadd.f32 %v357_v63, %v291_v19 }
  0xd5   :  { %295 = vst [vmem:[#allocation5 + $0x18] sm:$0xff] %v293_v20 }
  0xd6   :  { %308 = dma.vmem_to_hbm [thread:$0]  %s301_s2, 512, %s303_s20, [#allocation4], %s411_s17, %s411_s17, %s412_s18  }
  0xd7   :  { %408 = dma.done.wait [#allocation4], 512  }
  0xd8   :  { %409 = vsyncadd [#allocation4], 4294966784 }
  0xd9   :  { %313 = vsyncpa [#allocation3], 1 }
  0xda   :  { %314 = vsyncpa [#allocation4], 1 }

// kernel: tpu_custom_call.1
= control target key start
LH: loop header
LB: loop body
LE: loop exit
PB: predicated region body
PF: predicated region fallthrough
CT: control target
= control target key end

     0   :  { %8 = vsyncpa [#allocation3], 0  ;;  %s645_s0 = inlined_call_operand.vmem [shape: f32[2,18,128], index: 0, kind: input, shape index: {}]   ;;  %s646_s1 = inlined_call_operand.hbm [shape: f32[3,128,128], index: 1, kind: input, shape index: {}]   ;;  %s647_s2 = inlined_call_operand.vmem [shape: f32[1,128], index: 2, kind: input, shape index: {}]   ;;  %s648_s3 = inlined_call_operand.hbm [shape: f32[32,128], index: 3, kind: output, shape index: {}]  }
   0x1   :  { %9 = vsyncpa [#allocation4], 0  ;;  %s16_s14 = sshll.u32 %s646_s1, 4  ;;  %s410_s15 = smov [#allocation2]   ;;  %s17_s14 = int_to_ptr.hbm [resolvable:$true] %s16_s14 }
   0x2   :  { %s18_s16 = sshll.u32 %s410_s15, 4  ;;  %s411_s17 = smov 128   ;;  %s19_s16 = int_to_ptr.vmem [resolvable:$true] %s18_s16 }
   0x3   :  { %s412_s18 = smov 8  }
   0x4   :  { %24 = dma.hbm_to_vmem [thread:$0]  %s17_s14, 6144, %s19_s16, [#allocation3], %s411_s17, %s411_s17, %s412_s18  }
   0x5   :  { %406 = dma.done.wait [#allocation3], 6144  }
   0x6   :  { %407 = vsyncadd [#allocation3], 4294961152  ;;  %v68_v0 = vld [vmem:[#allocation2 + $0xf8] sm:$0xff]  ;;  %v67_v2 = vld [vmem:[#allocation2 + $0xf0] sm:$0xff]  ;;  %s302_s20 = sshll.u32 %s648_s3, 4  ;;  %s303_s20 = int_to_ptr.hbm [resolvable:$true] %s302_s20 }
   0x7   :  { %v440_v1 = vld [vmem:[#allocation2 + $0x178] sm:$0xff]  ;;  %69 = vmatpush.msra.mxu0 %v68_v0  ;;  %v445_v4 = vld [vmem:[#allocation2 + $0x170] sm:$0xff]  ;;  %203 = vmatpush.msra.mxu3 %v68_v0  ;;  %v66_v5 = vld [vmem:[#allocation2 + $0xe8] sm:$0xff] }
   0x8   :  { %134 = vmatpush.msra.mxu2 %v440_v1  ;;  %v443_v3 = vld [vmem:[#allocation2 + $0x78] sm:$0xff]  ;;  %v448_v6 = vld [vmem:[#allocation2 + $0x70] sm:$0xff]  ;;  %v450_v7 = vld [vmem:[#allocation2 + $0x168] sm:$0xff] }
   0x9   :  { %92 = vmatpush.msra.mxu1 %v443_v3  ;;  %70 = vmatpush.msra.mxu0 %v67_v2  ;;  %v453_v8 = vld [vmem:[#allocation2 + $0x68] sm:$0xff]  ;;  %v65_v9 = vld [vmem:[#allocation2 + $0xe0] sm:$0xff]  ;;  %v64_v12 = vld [vmem:[#allocation2 + $0xd8] sm:$0xff] }
   0xa   :  { %135 = vmatpush.msra.mxu2 %v445_v4  ;;  %204 = vmatpush.msra.mxu3 %v67_v2  ;;  %v456_v10 = vld [vmem:[#allocation2 + $0x160] sm:$0xff]  ;;  %v462_v13 = vld [vmem:[#allocation2 + $0x158] sm:$0xff]  ;;  %v63_v15 = vld [vmem:[#allocation2 + $0xd0] sm:$0xff] }
   0xb   :  { %93 = vmatpush.msra.mxu1 %v448_v6  ;;  %71 = vmatpush.msra.mxu0 %v66_v5  ;;  %v459_v11 = vld [vmem:[#allocation2 + $0x60] sm:$0xff]  ;;  %v465_v14 = vld [vmem:[#allocation2 + $0x58] sm:$0xff]  ;;  %v468_v16 = vld [vmem:[#allocation2 + $0x150] sm:$0xff] }
   0xc   :  { %136 = vmatpush.msra.mxu2 %v450_v7  ;;  %205 = vmatpush.msra.mxu3 %v66_v5  ;;  %v471_v17 = vld [vmem:[#allocation2 + $0x50] sm:$0xff]  ;;  %v62_v18 = vld [vmem:[#allocation2 + $0xc8] sm:$0xff]  ;;  %v61_v21 = vld [vmem:[#allocation2 + $0xc0] sm:$0xff] }
   0xd   :  { %94 = vmatpush.msra.mxu1 %v453_v8  ;;  %72 = vmatpush.msra.mxu0 %v65_v9  ;;  %v474_v19 = vld [vmem:[#allocation2 + $0x148] sm:$0xff]  ;;  %v480_v22 = vld [vmem:[#allocation2 + $0x140] sm:$0xff]  ;;  %v60_v24 = vld [vmem:[#allocation2 + $0xb8] sm:$0xff] }
   0xe   :  { %137 = vmatpush.msra.mxu2 %v456_v10  ;;  %206 = vmatpush.msra.mxu3 %v65_v9  ;;  %v477_v20 = vld [vmem:[#allocation2 + $0x48] sm:$0xff]  ;;  %v483_v23 = vld [vmem:[#allocation2 + $0x40] sm:$0xff]  ;;  %v486_v25 = vld [vmem:[#allocation2 + $0x138] sm:$0xff] }
   0xf   :  { %95 = vmatpush.msra.mxu1 %v459_v11  ;;  %73 = vmatpush.msra.mxu0 %v64_v12  ;;  %v489_v26 = vld [vmem:[#allocation2 + $0x38] sm:$0xff]  ;;  %v59_v27 = vld [vmem:[#allocation2 + $0xb0] sm:$0xff]  ;;  %v58_v30 = vld [vmem:[#allocation2 + $0xa8] sm:$0xff] }
  0x10   :  { %138 = vmatpush.msra.mxu2 %v462_v13  ;;  %207 = vmatpush.msra.mxu3 %v64_v12  ;;  %v492_v28 = vld [vmem:[#allocation2 + $0x130] sm:$0xff]  ;;  %v498_v31 = vld [vmem:[#allocation2 + $0x128] sm:$0xff]  ;;  %v57_v33 = vld [vmem:[#allocation2 + $0xa0] sm:$0xff] }
  0x11   :  { %96 = vmatpush.msra.mxu1 %v465_v14  ;;  %74 = vmatpush.msra.mxu0 %v63_v15  ;;  %v495_v29 = vld [vmem:[#allocation2 + $0x30] sm:$0xff]  ;;  %v501_v32 = vld [vmem:[#allocation2 + $0x28] sm:$0xff]  ;;  %v504_v34 = vld [vmem:[#allocation2 + $0x120] sm:$0xff] }
  0x12   :  { %139 = vmatpush.msra.mxu2 %v468_v16  ;;  %208 = vmatpush.msra.mxu3 %v63_v15  ;;  %v507_v35 = vld [vmem:[#allocation2 + $0x20] sm:$0xff]  ;;  %v56_v36 = vld [vmem:[#allocation2 + $0x98] sm:$0xff]  ;;  %v55_v39 = vld [vmem:[#allocation2 + $0x90] sm:$0xff] }
  0x13   :  { %97 = vmatpush.msra.mxu1 %v471_v17  ;;  %75 = vmatpush.msra.mxu0 %v62_v18  ;;  %v510_v37 = vld [vmem:[#allocation2 + $0x118] sm:$0xff]  ;;  %v516_v40 = vld [vmem:[#allocation2 + $0x110] sm:$0xff]  ;;  %v54_v42 = vld [vmem:[#allocation2 + $0x88] sm:$0xff] }
  0x14   :  { %140 = vmatpush.msra.mxu2 %v474_v19  ;;  %209 = vmatpush.msra.mxu3 %v62_v18  ;;  %v513_v38 = vld [vmem:[#allocation2 + $0x18] sm:$0xff]  ;;  %v519_v41 = vld [vmem:[#allocation2 + $0x10] sm:$0xff]  ;;  %v522_v43 = vld [vmem:[#allocation2 + $0x108] sm:$0xff] }
  0x15   :  { %98 = vmatpush.msra.mxu1 %v477_v20  ;;  %76 = vmatpush.msra.mxu0 %v61_v21  ;;  %v525_v44 = vld [vmem:[#allocation2 + $0x8] sm:$0xff]  ;;  %v53_v45 = vld [vmem:[#allocation2 + $0x80] sm:$0xff]  ;;  %v315_v56 = vld [vmem:[%s645_s0 + $0x18] sm:$0xff] }
  0x16   :  { %141 = vmatpush.msra.mxu2 %v480_v22  ;;  %210 = vmatpush.msra.mxu3 %v61_v21  ;;  %v528_v46 = vld [vmem:[#allocation2 + $0x100] sm:$0xff]  ;;  %v51_v52 = vld [vmem:[%s645_s0 + $0x9] sm:$0xff] }
  0x17   :  { %99 = vmatpush.msra.mxu1 %v483_v23  ;;  %77 = vmatpush.msra.mxu0 %v60_v24  ;;  %v532_v47 = vld [vmem:[#allocation2] sm:$0xff]  ;;  %v116_v53 = vld [vmem:[%s645_s0 + $0xa] sm:$0xff] }
  0x18   :  { %142 = vmatpush.msra.mxu2 %v486_v25  ;;  %211 = vmatpush.msra.mxu3 %v60_v24  ;;  %v50_v48 = vld [vmem:[%s645_s0 + $0x1] sm:$0xff]  ;;  %v317_v51 = vld [vmem:[%s645_s0 + $0x19] sm:$0xff] }
  0x19   :  { %100 = vmatpush.msra.mxu1 %v489_v26  ;;  %78 = vmatpush.msra.mxu0 %v59_v27  ;;  %v115_v49 = vld [vmem:[%s645_s0 + $0x2] sm:$0xff]  ;;  %v319_v58 = vld [vmem:[%s645_s0 + $0x1a] sm:$0xff] }
  0x1a   :  { %143 = vmatpush.msra.mxu2 %v492_v28  ;;  %212 = vmatpush.msra.mxu3 %v59_v27  ;;  %v32_v50 = vld [vmem:[%s645_s0] sm:$0xff]  ;;  %v33_v54 = vld [vmem:[%s645_s0 + $0x8] sm:$0xff] }
  0x1b   :  { %101 = vmatpush.msra.mxu1 %v495_v29  ;;  %79 = vmatpush.msra.mxu0 %v58_v30  ;;  %v318_v55 = vld [vmem:[%s645_s0 + $0x21] sm:$0xff]  ;;  %v357_v63 = vld [vmem:[%s647_s2] ss:$0 sm:$0xff] }
  0x1c   :  { %144 = vmatpush.msra.mxu2 %v498_v31  ;;  %213 = vmatpush.msra.mxu3 %v58_v30  ;;  %v316_v57 = vld [vmem:[%s645_s0 + $0x20] sm:$0xff] }
  0x1d   :  { %102 = vmatpush.msra.mxu1 %v501_v32  ;;  %80 = vmatpush.msra.mxu0 %v57_v33  ;;  %v320_v59 = vld [vmem:[%s645_s0 + $0x22] sm:$0xff]  ;;  %s413_s0 = smov [#allocation5]  }
  0x1e   :  { %145 = vmatpush.msra.mxu2 %v504_v34  ;;  %214 = vmatpush.msra.mxu3 %v57_v33  ;;  %s300_s2 = sshll.u32 %s413_s0, 4  ;;  %s301_s2 = int_to_ptr.vmem [resolvable:$true] %s300_s2 }
  0x1f   :  { %103 = vmatpush.msra.mxu1 %v507_v35  ;;  %81 = vmatpush.msra.mxu0 %v56_v36 }
  0x20   :  { %146 = vmatpush.msra.mxu2 %v510_v37  ;;  %215 = vmatpush.msra.mxu3 %v56_v36 }
  0x21   :  { %104 = vmatpush.msra.mxu1 %v513_v38  ;;  %82 = vmatpush.msra.mxu0 %v55_v39 }
  0x22   :  { %147 = vmatpush.msra.mxu2 %v516_v40  ;;  %216 = vmatpush.msra.mxu3 %v55_v39 }
  0x23   :  { %105 = vmatpush.msra.mxu1 %v519_v41  ;;  %83 = vmatpush.msra.mxu0 %v54_v42 }
  0x24   :  { %148 = vmatpush.msra.mxu2 %v522_v43  ;;  %217 = vmatpush.msra.mxu3 %v54_v42 }
  0x25   :  { %106 = vmatpush.msra.mxu1 %v525_v44  ;;  %84 = vmatpush.msra.mxu0 %v53_v45 }
  0x26   :  { %149 = vmatpush.msra.mxu2 %v528_v46  ;;  %218 = vmatpush.msra.mxu3 %v53_v45 }
  0x27   :  { %226 = vmatpush.msrb.mxu0 %v443_v3  ;;  %107 = vmatpush.msra.mxu1 %v532_v47 }
  0x28   :  { %321 = vmatpush.msrb.mxu2 %v443_v3  ;;  %337 = vmatpush.msrb.mxu3 %v440_v1 }
  0x29   :  { %227 = vmatpush.msrb.mxu0 %v448_v6  ;;  %267 = vmatpush.msrb.mxu1 %v440_v1 }
  0x2a   :  { %322 = vmatpush.msrb.mxu2 %v448_v6  ;;  %338 = vmatpush.msrb.mxu3 %v445_v4 }
  0x2b   :  { %228 = vmatpush.msrb.mxu0 %v453_v8  ;;  %268 = vmatpush.msrb.mxu1 %v445_v4 }
  0x2c   :  { %323 = vmatpush.msrb.mxu2 %v453_v8  ;;  %339 = vmatpush.msrb.mxu3 %v450_v7 }
  0x2d   :  { %229 = vmatpush.msrb.mxu0 %v459_v11  ;;  %269 = vmatpush.msrb.mxu1 %v450_v7 }
  0x2e   :  { %324 = vmatpush.msrb.mxu2 %v459_v11  ;;  %340 = vmatpush.msrb.mxu3 %v456_v10 }
  0x2f   :  { %230 = vmatpush.msrb.mxu0 %v465_v14  ;;  %270 = vmatpush.msrb.mxu1 %v456_v10 }
  0x30   :  { %325 = vmatpush.msrb.mxu2 %v465_v14  ;;  %341 = vmatpush.msrb.mxu3 %v462_v13 }
  0x31   :  { %231 = vmatpush.msrb.mxu0 %v471_v17  ;;  %271 = vmatpush.msrb.mxu1 %v462_v13 }
  0x32   :  { %326 = vmatpush.msrb.mxu2 %v471_v17  ;;  %342 = vmatpush.msrb.mxu3 %v468_v16 }
  0x33   :  { %232 = vmatpush.msrb.mxu0 %v477_v20  ;;  %272 = vmatpush.msrb.mxu1 %v468_v16 }
  0x34   :  { %327 = vmatpush.msrb.mxu2 %v477_v20  ;;  %343 = vmatpush.msrb.mxu3 %v474_v19 }
  0x35   :  { %233 = vmatpush.msrb.mxu0 %v483_v23  ;;  %273 = vmatpush.msrb.mxu1 %v474_v19 }
  0x36   :  { %328 = vmatpush.msrb.mxu2 %v483_v23  ;;  %85 = vmatmul.f32.vlgmr.msra.gmra.mxu0 %v50_v48 }
  0x37   :  { %150 = vmatmul.f32.vlgmr.msra.gmra.mxu2 %v115_v49  ;;  %234 = vmatpush.msrb.mxu0 %v489_v26 }
  0x38   :  { %329 = vmatpush.msrb.mxu2 %v489_v26  ;;  %274 = vmatpush.msrb.mxu1 %v480_v22 }
  0x39   :  { %344 = vmatpush.msrb.mxu3 %v480_v22  ;;  %108 = vmatmul.f32.vlgmr.msra.gmra.mxu1 %v32_v50 }
  0x3a   :  { %219 = vmatmul.f32.vlgmr.msra.gmra.mxu3 %v317_v51  ;;  %235 = vmatpush.msrb.mxu0 %v495_v29 }
  0x3b   :  { %330 = vmatpush.msrb.mxu2 %v495_v29  ;;  %275 = vmatpush.msrb.mxu1 %v486_v25 }
  0x3c   :  { %345 = vmatpush.msrb.mxu3 %v486_v25  ;;  %236 = vmatpush.msrb.mxu0 %v501_v32 }
  0x3d   :  { %331 = vmatpush.msrb.mxu2 %v501_v32  ;;  %276 = vmatpush.msrb.mxu1 %v492_v28 }
  0x3e   :  { %346 = vmatpush.msrb.mxu3 %v492_v28  ;;  %237 = vmatpush.msrb.mxu0 %v507_v35 }
  0x3f   :  { %332 = vmatpush.msrb.mxu2 %v507_v35  ;;  %277 = vmatpush.msrb.mxu1 %v498_v31 }
  0x40   :  { %347 = vmatpush.msrb.mxu3 %v498_v31  ;;  %88 = vmatmul.f32.gmra.mxu0 %v51_v52 }
  0x41   :  { %153 = vmatmul.f32.gmra.mxu2 %v116_v53  ;;  %238 = vmatpush.msrb.mxu0 %v513_v38 }
  0x42   :  { %333 = vmatpush.msrb.mxu2 %v513_v38  ;;  %278 = vmatpush.msrb.mxu1 %v504_v34 }
  0x43   :  { %348 = vmatpush.msrb.mxu3 %v504_v34  ;;  %111 = vmatmul.f32.gmra.mxu1 %v33_v54 }
  0x44   :  { %222 = vmatmul.f32.gmra.mxu3 %v318_v55  ;;  %239 = vmatpush.msrb.mxu0 %v519_v41 }
  0x45   :  { %334 = vmatpush.msrb.mxu2 %v519_v41  ;;  %279 = vmatpush.msrb.mxu1 %v510_v37 }
  0x46   :  { %349 = vmatpush.msrb.mxu3 %v510_v37  ;;  %240 = vmatpush.msrb.mxu0 %v525_v44 }
  0x47   :  { %335 = vmatpush.msrb.mxu2 %v525_v44  ;;  %280 = vmatpush.msrb.mxu1 %v516_v40 }
  0x48   :  { %350 = vmatpush.msrb.mxu3 %v516_v40  ;;  %241 = vmatpush.msrb.mxu0 %v532_v47 }
  0x49   :  { %336 = vmatpush.msrb.mxu2 %v532_v47  ;;  %281 = vmatpush.msrb.mxu1 %v522_v43 }
  0x4a   :  { %351 = vmatpush.msrb.mxu3 %v522_v43  ;;  %242 = vmatmul.f32.vlgmr.msrb.gmra.mxu0 %v315_v56 }
  0x4b   :  { %245 = vmatmul.f32.vlgmr.msrb.gmra.mxu2 %v316_v57  ;;  %282 = vmatpush.msrb.mxu1 %v528_v46 }
  0x4c   :  { %352 = vmatpush.msrb.mxu3 %v528_v46  ;;  %283 = vmatmul.f32.vlgmr.msrb.gmra.mxu1 %v319_v58 }
  0x4d   :  { %286 = vmatmul.f32.vlgmr.msrb.gmra.mxu3 %v320_v59 }
  0xb3   :  { %v86_v60 = vpop.f32.mrf.mxu0 }
  0xb6   :  { %v109_v61 = vpop.f32.mrf.mxu1 }
  0xb7   :  { %v110_v62 = vadd.f32 %v109_v61, %v86_v60 }
  0xba   :  { %v151_v0 = vpop.f32.mrf.mxu2 }
  0xbb   :  { %v157_v1 = vadd.f32 %v151_v0, %v110_v62 }
  0xbd   :  { %v162_v2 = vadd.f32 %v357_v63, %v157_v1  ;;  %v220_v3 = vpop.f32.mrf.mxu3  ;;  %v89_v4 = vpop.f32.mrf.mxu0 }
  0xbf   :  { %164 = vst [vmem:[#allocation5] sm:$0xff] %v162_v2 }
  0xc0   :  { %v112_v5 = vpop.f32.mrf.mxu1 }
  0xc1   :  { %v113_v6 = vadd.f32 %v112_v5, %v89_v4 }
  0xc4   :  { %v154_v7 = vpop.f32.mrf.mxu2 }
  0xc5   :  { %v158_v8 = vadd.f32 %v154_v7, %v113_v6 }
  0xc7   :  { %v163_v9 = vadd.f32 %v357_v63, %v158_v8  ;;  %v223_v10 = vpop.f32.mrf.mxu3  ;;  %v243_v11 = vpop.f32.mrf.mxu0 }
  0xc8   :  { %v244_v12 = vadd.f32 %v243_v11, %v220_v3 }
  0xc9   :  { %165 = vst [vmem:[#allocation5 + $0x8] sm:$0xff] %v163_v9  ;;  %v284_v13 = vpop.f32.mrf.mxu1 }
  0xca   :  { %v290_v14 = vadd.f32 %v284_v13, %v244_v12 }
  0xcc   :  { %v292_v15 = vadd.f32 %v357_v63, %v290_v14 }
  0xce   :  { %v246_v16 = vpop.f32.mrf.mxu2  ;;  %294 = vst [vmem:[#allocation5 + $0x10] sm:$0xff] %v292_v15 }
  0xcf   :  { %v247_v17 = vadd.f32 %v246_v16, %v223_v10 }
  0xd0   :  { %v287_v18 = vpop.f32.mrf.mxu3 }
  0xd1   :  { %v291_v19 = vadd.f32 %v287_v18, %v247_v17 }
  0xd3   :  { %v293_v20 = vadd.f32 %v357_v63, %v291_v19 }
  0xd5   :  { %295 = vst [vmem:[#allocation5 + $0x18] sm:$0xff] %v293_v20 }
  0xd6   :  { %308 = dma.vmem_to_hbm [thread:$0]  %s301_s2, 512, %s303_s20, [#allocation4], %s411_s17, %s411_s17, %s412_s18  }
  0xd7   :  { %408 = dma.done.wait [#allocation4], 512  }
  0xd8   :  { %409 = vsyncadd [#allocation4], 4294966784 }
  0xd9   :  { %313 = vsyncpa [#allocation3], 1 }
  0xda   :  { %314 = vsyncpa [#allocation4], 1 }

</bundles_post_ra>
